<compile_context>
chip_gen: v5e
topology: v5e:2x2
jax: 0.10.0
libtpu: 0.0.40
codegen_flags: <defaults>
</compile_context>

<pallas_src>
import jax
import jax.numpy as jnp
from jax.experimental import pallas as pl
from jax.experimental.pallas import tpu as pltpu


# ---------------------------------------------------------------------------
# Kernel body: plain tile copy.
# ---------------------------------------------------------------------------
def _fir_copy_kernel(fir_ref, out_ref):
    out_ref[...] = fir_ref[...]


# Thresholds for the no-grid vs. row-tiled paths.
_NO_GRID_MAX_BYTES = 2 << 20      # <= 2 MiB per buffer: whole array in VMEM.
_TILE_TARGET_BYTES = 1 << 20      # ~1 MiB row-tile for the streaming path.


def fir_forward(fir: jax.Array) -> jax.Array:
    """Pallas equivalent of FIRModel.forward(x): returns the fir parameter."""
    size_r, size_c = fir.shape
    nbytes = size_r * size_c * fir.dtype.itemsize
    cost = pl.CostEstimate(flops=0, transcendentals=0, bytes_accessed=2 * nbytes)

    if nbytes <= _NO_GRID_MAX_BYTES or size_r < 8:
        # Small / moderate: single no-grid call, whole array resident in VMEM.
        return pl.pallas_call(
            _fir_copy_kernel,
            out_shape=jax.ShapeDtypeStruct(fir.shape, fir.dtype),
            in_specs=[pl.BlockSpec(memory_space=pltpu.MemorySpace.VMEM)],
            out_specs=pl.BlockSpec(memory_space=pltpu.MemorySpace.VMEM),
            cost_estimate=cost,
        )(fir)

    # Large: stream sublane-aligned row tiles; full columns -> lane-dense
    # unmasked stores.  ~1 MiB per tile keeps double-buffered in+out buffers
    # comfortably inside scoped VMEM on v5e/v6e/v7x.
    row_bytes = size_c * fir.dtype.itemsize
    block_rows = max(8, (_TILE_TARGET_BYTES // row_bytes) // 8 * 8)
    block_rows = min(block_rows, size_r)
    grid = (pl.cdiv(size_r, block_rows),)

    return pl.pallas_call(
        _fir_copy_kernel,
        out_shape=jax.ShapeDtypeStruct(fir.shape, fir.dtype),
        grid=grid,
        in_specs=[pl.BlockSpec((block_rows, size_c), lambda i: (i, 0))],
        out_specs=pl.BlockSpec((block_rows, size_c), lambda i: (i, 0)),
        compiler_params=pltpu.CompilerParams(
            dimension_semantics=("parallel",)
        ),
        cost_estimate=cost,
    )(fir)


# ---------------------------------------------------------------------------
# Parameter construction (mirrors FIRModel.__init__ exactly).
# ---------------------------------------------------------------------------
def init_fir_param(init: str, size: int, key: jax.Array) -> jax.Array:
    """Mirror FIRModel.__init__ control flow exactly (including its quirk).

    - 'impulse'     -> zeros with 1.0 at (size//2, size//2)
    - 'ones'        -> ones is assigned, then immediately OVERWRITTEN by randn
                       because the original uses `if ... if ... else`, not `elif`.
    - anything else -> randn
    """
    if init == "ones":
        fir = jnp.ones((size, size), dtype=jnp.float32)
    if init == "impulse":
        fir = jnp.zeros((size, size), dtype=jnp.float32)
        fir = fir.at[size // 2, size // 2].set(1.0)
    else:
        fir = jax.random.normal(key, (size, size), dtype=jnp.float32)
    return fir


if __name__ == "__main__":
    key = jax.random.PRNGKey(0)
    size = 16

    # 'impulse' gives a fully deterministic parameter for exact checking.
    fir_param = init_fir_param("impulse", size, key)
    expected = init_fir_param("impulse", size, key)  # independent reference copy

    x = 0  # forward ignores its input (it is typed `x: int` in the module)

    out = fir_forward(fir_param)
    out = jax.block_until_ready(out)

    assert out.shape == (size, size) and out.dtype == jnp.float32
    assert bool(jnp.all(out == expected))
    assert float(out[size // 2, size // 2]) == 1.0

    # Also exercise a 'randn'-initialized parameter for good measure.
    fir_param2 = init_fir_param("randn", 32, key)
    out2 = jax.block_until_ready(fir_forward(fir_param2))
    assert bool(jnp.all(out2 == fir_param2))

    print("KERNEL_OK")
</pallas_src>

<mosaic_0001>
module attributes {stable_mosaic.version = 11 : i64} {
  func.func @_fir_copy_kernel(%arg0: memref<16x16xf32, #tpu.memory_space<vmem>>, %arg1: memref<16x16xf32, #tpu.memory_space<vmem>>) attributes {dimension_semantics = [], scalar_prefetch = 0 : i64, scratch_operands = 0 : i64, tpu.core_type = #tpu.core_type<tc>} {
    %c0 = arith.constant 0 : index
    %c0_0 = arith.constant 0 : index
    %0 = vector.load %arg0[%c0, %c0_0] : memref<16x16xf32, #tpu.memory_space<vmem>>, vector<16x16xf32>
    %c0_1 = arith.constant 0 : index
    %c0_2 = arith.constant 0 : index
    %1 = vector.load %arg1[%c0_1, %c0_2] : memref<16x16xf32, #tpu.memory_space<vmem>>, vector<16x16xf32>
    tpu.vector_store %arg1[%c0_1, %c0_2], %0 {strides = array<i32>} : memref<16x16xf32, #tpu.memory_space<vmem>>, vector<16x16xf32>,
    return
  }
}

</mosaic_0001>

<bundles_post_ra>
// kernel: tpu_custom_call.1
= control target key start
LH: loop header
LB: loop body
LE: loop exit
PB: predicated region body
PF: predicated region fallthrough
CT: control target
= control target key end

     0   :  { %6 = vsyncpa [#allocation3], 0  ;;  %s125_s0 = inlined_call_operand.hbm [shape: f32[16,16], index: 0, kind: input, shape index: {}]   ;;  %s126_s1 = inlined_call_operand.hbm [shape: f32[16,16], index: 1, kind: output, shape index: {}]  }
   0x1   :  { %7 = vsyncpa [#allocation4], 0  ;;  %s12_s8 = sshll.u32 %s125_s0, 4  ;;  %s105_s9 = smov [#allocation2]   ;;  %s13_s8 = int_to_ptr.hbm [resolvable:$true] %s12_s8 }
   0x2   :  { %s14_s10 = sshll.u32 %s105_s9, 4  ;;  %s106_s11 = smov 128   ;;  %s15_s10 = int_to_ptr.vmem [resolvable:$true] %s14_s10 }
   0x3   :  { %s107_s12 = smov 8  }
   0x4   :  { %20 = dma.hbm_to_vmem [thread:$0]  %s13_s8, 256, %s15_s10, [#allocation3], %s106_s11, %s106_s11, %s107_s12  }
   0x5   :  { %101 = dma.done.wait [#allocation3], 256  }
   0x6   :  { %102 = vsyncadd [#allocation3], 4294967040  ;;  %s108_s13 = smov [#allocation5]   ;;  %s36_s17 = sshll.u32 %s126_s1, 4  ;;  %vm27_vm0 = vcmask 130048   ;;  %v25_v0 = vld [vmem:[#allocation2] sm:$0xff]  ;;  %s37_s17 = int_to_ptr.hbm [resolvable:$true] %s36_s17 }
   0x7   :  { %s34_s14 = sshll.u32 %s108_s13, 4  ;;  %v26_v1 = vld [vmem:[#allocation2 + $0x8] sm:$0xff]  ;;  %28 = vst.msk [vmem:[#allocation5] sm:$0xff] %vm27_vm0, %v25_v0  ;;  %s35_s14 = int_to_ptr.vmem [resolvable:$true] %s34_s14 }
   0x8   :  { %29 = vst.msk [vmem:[#allocation5 + $0x8] sm:$0xff] %vm27_vm0, %v26_v1 }
   0x9   :  { %42 = dma.vmem_to_hbm [thread:$0]  %s35_s14, 256, %s37_s17, [#allocation4], %s106_s11, %s106_s11, %s107_s12  }
   0xa   :  { %103 = dma.done.wait [#allocation4], 256  }
   0xb   :  { %104 = vsyncadd [#allocation4], 4294967040 }
   0xc   :  { %47 = vsyncpa [#allocation3], 1 }
   0xd   :  { %48 = vsyncpa [#allocation4], 1 }

</bundles_post_ra>
